<compile_context>
chip_gen: v5e
topology: v5e:2x2
jax: 0.10.0
libtpu: 0.0.40
codegen_flags: <defaults>
</compile_context>

<pallas_src>
import functools
import math

import jax
import jax.numpy as jnp
from jax import lax
from jax.experimental import pallas as pl
from jax.experimental.pallas import tpu as pltpu


def tgat_head_kernel(adj_ref, x_ref, t_ref,
                     w_in_ref, b_in_ref,
                     w_qkv_ref, b_qkv_ref,
                     out_ref, *, hidden_dim, dim_qkv, compute_dtype):
    H, D = hidden_dim, dim_qkv
    Bb, N, Din = x_ref.shape
    cd = compute_dtype

    x = x_ref[...]                          # (Bb, N, Din)  f32
    t = t_ref[...]                          # (Bb, N, 1)    f32
    # (x @ W) * t == (x * t) @ W  -> scale x once, before the matmuls.
    xt = x * t

    x2 = x.reshape(Bb * N, Din)             # merge leading dims; lane dim intact
    xt2 = xt.reshape(Bb * N, Din)
    w_in = w_in_ref[...]                    # (Din, 3H) = [wx | wn | wc]  f32
    b_in = b_in_ref[...]                    # (1, 3H)                     f32

    # Input projections without redundant rows.
    h_x = jnp.maximum(
        jnp.dot(x2, w_in[:, 0:H], preferred_element_type=jnp.float32)
        + b_in[:, 0:H], 0.0)                                            # (Bb*N, H)
    sup2 = jnp.dot(xt2, w_in[:, H:3 * H],
                   preferred_element_type=jnp.float32)                  # (Bb*N, 2H)
    sup = sup2.reshape(Bb, N, 2 * H)

    # One batched adj matmul covers both graph convolutions (MXU, bf16 feed).
    adj = adj_ref[...]                                                  # (Bb, N, N)
    agg = lax.dot_general(adj.astype(cd), sup.astype(cd),
                          dimension_numbers=(((2,), (1,)), ((0,), (0,))),
                          preferred_element_type=jnp.float32)           # (Bb, N, 2H)
    agg2 = agg.reshape(Bb * N, 2 * H)
    h_n = jnp.maximum(agg2[:, 0:H] + b_in[:, H:2 * H], 0.0)
    # (adj + I) @ sup_c == adj @ sup_c + sup_c  (no explicit identity matrix;
    # the "+ sup_c" uses the exact f32 sup).
    h_c = jnp.maximum(agg2[:, H:2 * H] + sup2[:, H:2 * H]
                      + b_in[:, 2 * H:3 * H], 0.0)

    # Dropout p = 0.0 (module default / eval mode) -> identity.

    # Fused q/k/v: [h_x | h_n | h_c] @ block_diag(wq, wk, wv) + [bq | bk | bv].
    h_all = jnp.concatenate([h_x, h_n, h_c], axis=-1)                   # (Bb*N, 3H)
    qkv = (jnp.dot(h_all.astype(cd), w_qkv_ref[...],
                   preferred_element_type=jnp.float32)
           + b_qkv_ref[...])                                            # (Bb*N, 3D)

    scale = 1.0 / math.sqrt(D)
    q = (qkv[:, 0:D] * scale).reshape(Bb, N, D)
    k = qkv[:, D:2 * D].reshape(Bb, N, D)
    v = qkv[:, 2 * D:3 * D].reshape(Bb, N, D)

    # Batched per-graph attention; softmax kept in f32 (VPU/EUP path).
    s = lax.dot_general(q.astype(cd), k.astype(cd),
                        dimension_numbers=(((2,), (2,)), ((0,), (0,))),
                        preferred_element_type=jnp.float32)             # (Bb, N, N)
    s_max = jnp.max(s, axis=-1, keepdims=True)
    p = jnp.exp(s - s_max)
    sm = p / jnp.sum(p, axis=-1, keepdims=True)   # exact reciprocal (review fix)
    out = lax.dot_general(sm.astype(cd), v.astype(cd),
                          dimension_numbers=(((2,), (1,)), ((0,), (0,))),
                          preferred_element_type=jnp.float32)           # (Bb, N, D)
    out_ref[...] = out.astype(out_ref.dtype)


def pack_params(params, dim_qkv, compute_dtype):
    """Pack the 12 per-layer tensors into 4 kernel operands."""
    H = params["wx"].shape[1]
    D = dim_qkv
    w_in = jnp.concatenate([params["wx"], params["wn"], params["wc"]], axis=1)   # (Din, 3H)
    b_in = jnp.concatenate([params["bx"], params["bn"], params["bc"]], axis=1)   # (1, 3H)
    w_qkv = jnp.zeros((3 * H, 3 * D), jnp.float32)
    w_qkv = w_qkv.at[0:H, 0:D].set(params["wq"])
    w_qkv = w_qkv.at[H:2 * H, D:2 * D].set(params["wk"])
    w_qkv = w_qkv.at[2 * H:3 * H, 2 * D:3 * D].set(params["wv"])
    b_qkv = jnp.concatenate([params["bq"], params["bk"], params["bv"]], axis=1)  # (1, 3D)
    return (w_in.astype(jnp.float32), b_in.astype(jnp.float32),
            w_qkv.astype(compute_dtype), b_qkv.astype(jnp.float32))


def tgat_head_forward_batched(adj, x, t, params, *, block_b=8,
                              compute_dtype=jnp.bfloat16):
    """adj: (B,N,N)  x: (B,N,Din)  t: (B,N) or (B,N,1)  ->  (B,N,dim_qkv)."""
    B, N, Din = x.shape
    H = params["wx"].shape[1]
    D = params["wq"].shape[1]
    x = x.astype(jnp.float32)
    t = t.reshape(B, N, 1).astype(jnp.float32)

    # Block of graphs per grid step; pad B to a multiple of Bb with zero graphs.
    Bb = max(1, min(block_b, B))
    n_blocks = -(-B // Bb)
    B_pad = n_blocks * Bb
    if B_pad != B:
        pad = B_pad - B
        adj = jnp.concatenate([adj, jnp.zeros((pad, N, N), adj.dtype)], axis=0)
        x = jnp.concatenate([x, jnp.zeros((pad, N, Din), x.dtype)], axis=0)
        t = jnp.concatenate([t, jnp.zeros((pad, N, 1), t.dtype)], axis=0)

    # adj entries are 0/1 -> exact in bf16; halves its HBM traffic and VMEM use.
    adj_in = adj.astype(compute_dtype)
    w_in, b_in, w_qkv, b_qkv = pack_params(params, D, compute_dtype)
    cd_bytes = jnp.dtype(compute_dtype).itemsize

    flops = B_pad * (2 * N * Din * H              # x @ wx
                     + 2 * N * Din * (2 * H)      # (x*t) @ [wn|wc]
                     + 2 * N * N * (2 * H)        # adj @ [sup_n | sup_c]
                     + 2 * N * (3 * H) * (3 * D)  # fused q/k/v (as executed)
                     + 2 * 2 * N * N * D)         # q@k^T and softmax@v
    bytes_accessed = (B_pad * N * N * cd_bytes
                      + 4 * B_pad * N * (Din + 1 + D)
                      + 4 * (w_in.size + b_in.size + b_qkv.size)
                      + cd_bytes * w_qkv.size)
    cost = pl.CostEstimate(flops=flops, transcendentals=B_pad * N * N,
                           bytes_accessed=bytes_accessed)

    # Scoped VMEM: double-buffered blocks + weights + generous room for the
    # live intermediates, clamped to [32 MiB, 64 MiB] (v5e default is 16 MiB;
    # v7x physical is 64 MiB).
    step_bytes = (2 * (Bb * N * N * cd_bytes + 4 * Bb * N * (Din + 1 + D))
                  + 4 * (w_in.size + b_in.size + b_qkv.size) + cd_bytes * w_qkv.size
                  + 8 * Bb * N * (N + 6 * H + 3 * D))
    vmem_limit = int(min(64 * 2 ** 20, max(32 * 2 ** 20, 4 * step_bytes)))

    grid_spec = pltpu.PrefetchScalarGridSpec(
        num_scalar_prefetch=0,
        grid=(n_blocks,),
        in_specs=[
            pl.BlockSpec((Bb, N, N), lambda b: (b, 0, 0)),      # adj (compute dtype)
            pl.BlockSpec((Bb, N, Din), lambda b: (b, 0, 0)),    # x
            pl.BlockSpec((Bb, N, 1), lambda b: (b, 0, 0)),      # t
            pl.BlockSpec((Din, 3 * H), lambda b: (0, 0)),       # packed input weights
            pl.BlockSpec((1, 3 * H), lambda b: (0, 0)),         # packed input biases
            pl.BlockSpec((3 * H, 3 * D), lambda b: (0, 0)),     # block-diag q/k/v weight
            pl.BlockSpec((1, 3 * D), lambda b: (0, 0)),         # packed q/k/v biases
        ],
        out_specs=pl.BlockSpec((Bb, N, D), lambda b: (b, 0, 0)),
    )
    out = pl.pallas_call(
        functools.partial(tgat_head_kernel, hidden_dim=H, dim_qkv=D,
                          compute_dtype=compute_dtype),
        out_shape=jax.ShapeDtypeStruct((B_pad, N, D), jnp.float32),
        grid_spec=grid_spec,
        compiler_params=pltpu.CompilerParams(
            dimension_semantics=("parallel",),
            vmem_limit_bytes=vmem_limit),
        cost_estimate=cost,
    )(adj_in, x, t, w_in, b_in, w_qkv, b_qkv)
    return out[:B]


def tgat_head_forward(adj, x, t, params, **kwargs):
    """Single-graph convenience wrapper matching the PyTorch module signature."""
    return tgat_head_forward_batched(adj[None], x[None], t[None], params, **kwargs)[0]


def init_params(key, input_dim, hidden_dim, dim_qkv):
    """Deterministic synthetic init mirroring the PyTorch module's shapes.

    nn.Linear weights are generated as (out,in) then transposed to (in,out);
    TGraphConvolution weights are natively (in,out)."""
    keys = jax.random.split(key, 12)

    def unif(k, shape, bound):
        return jax.random.uniform(k, shape, jnp.float32, -bound, bound)

    b_lin = 1.0 / math.sqrt(input_dim)
    wx = unif(keys[0], (hidden_dim, input_dim), b_lin).T
    bx = unif(keys[1], (1, hidden_dim), b_lin)
    b_gc = 1.0 / math.sqrt(hidden_dim)
    wn = unif(keys[2], (input_dim, hidden_dim), b_gc)
    bn = unif(keys[3], (1, hidden_dim), b_gc)
    wc = unif(keys[4], (input_dim, hidden_dim), b_gc)
    bc = unif(keys[5], (1, hidden_dim), b_gc)
    b_qkv = 1.0 / math.sqrt(hidden_dim)
    wq = unif(keys[6], (dim_qkv, hidden_dim), b_qkv).T
    bq = unif(keys[7], (1, dim_qkv), b_qkv)
    wk = unif(keys[8], (dim_qkv, hidden_dim), b_qkv).T
    bk = unif(keys[9], (1, dim_qkv), b_qkv)
    wv = unif(keys[10], (dim_qkv, hidden_dim), b_qkv).T
    bv = unif(keys[11], (1, dim_qkv), b_qkv)
    return dict(wx=wx, bx=bx, wn=wn, bn=bn, wc=wc, bc=bc,
                wq=wq, bq=bq, wk=wk, bk=bk, wv=wv, bv=bv)


def reference_forward(adj, x, t, params):
    """Pure-JAX single-graph reference of the PyTorch forward (eval, dropout=0)."""
    t_col = t.reshape(-1, 1)
    h_x = jax.nn.relu(x @ params["wx"] + params["bx"])
    h_n = jax.nn.relu(adj @ ((x @ params["wn"]) * t_col) + params["bn"])
    eye = jnp.eye(adj.shape[0], dtype=adj.dtype)
    h_c = jax.nn.relu((adj + eye) @ ((x @ params["wc"]) * t_col) + params["bc"])
    q = h_x @ params["wq"] + params["bq"]
    k = h_n @ params["wk"] + params["bk"]
    v = h_c @ params["wv"] + params["bv"]
    a = (q @ k.T) / math.sqrt(q.shape[-1])
    return jax.nn.softmax(a, axis=-1) @ v


if __name__ == "__main__":
    B, N, INPUT_DIM, HIDDEN_DIM, DIM_QKV = 16, 8, 16, 32, 32

    key = jax.random.PRNGKey(0)
    k_adj, k_x, k_t, k_par = jax.random.split(key, 4)

    # symmetric 0/1 adjacency per graph, no self loops
    a_rand = jax.random.uniform(k_adj, (B, N, N), jnp.float32)
    adj = ((a_rand + jnp.swapaxes(a_rand, -1, -2)) > 1.0).astype(jnp.float32)
    adj = adj * (1.0 - jnp.eye(N, dtype=jnp.float32))
    x = jax.random.normal(k_x, (B, N, INPUT_DIM), jnp.float32)
    t = jax.random.uniform(k_t, (B, N), jnp.float32)
    params = init_params(k_par, INPUT_DIM, HIDDEN_DIM, DIM_QKV)
    PNum = None  # unused by the forward pass (matches the PyTorch module)

    ref = jax.vmap(lambda a_, x_, t_: reference_forward(a_, x_, t_, params))(adj, x, t)

    # 1) f32 compute path: validates the fused algorithm to tight tolerance.
    out_f32 = jax.block_until_ready(
        tgat_head_forward_batched(adj, x, t, params, block_b=4,
                                  compute_dtype=jnp.float32))
    assert out_f32.shape == (B, N, DIM_QKV)
    err_f32 = jnp.max(jnp.abs(out_f32 - ref))
    assert jnp.allclose(out_f32, ref, atol=1e-4, rtol=1e-4), f"f32 max abs err {err_f32}"

    # 2) default bf16-MXU path (perf config): adj + matmul operands in bf16 with
    #    f32 accumulation; tolerance reflects bf16 operand rounding only.
    out_bf16 = jax.block_until_ready(
        tgat_head_forward_batched(adj, x, t, params, block_b=4))
    assert out_bf16.shape == (B, N, DIM_QKV)
    err_bf16 = jnp.max(jnp.abs(out_bf16 - ref))
    assert jnp.allclose(out_bf16, ref, atol=5e-2, rtol=5e-2), f"bf16 max abs err {err_bf16}"

    print("KERNEL_OK")
</pallas_src>

<mosaic_0001>
module attributes {stable_mosaic.version = 11 : i64} {
  func.func @tgat_head_kernel(%arg0: i32, %arg1: memref<4x8x8xf32, #tpu.memory_space<vmem>>, %arg2: memref<4x8x16xf32, #tpu.memory_space<vmem>>, %arg3: memref<4x8x1xf32, #tpu.memory_space<vmem>>, %arg4: memref<16x96xf32, #tpu.memory_space<vmem>>, %arg5: memref<1x96xf32, #tpu.memory_space<vmem>>, %arg6: memref<96x96xf32, #tpu.memory_space<vmem>>, %arg7: memref<1x96xf32, #tpu.memory_space<vmem>>, %arg8: memref<4x8x32xf32, #tpu.memory_space<vmem>>) attributes {dimension_semantics = [#tpu.dimension_semantics<parallel>], iteration_bounds = array<i64: 4>, scalar_prefetch = 0 : i64, scratch_operands = 0 : i64, tpu.core_type = #tpu.core_type<tc>, window_params = [{transform_indices = @transform_0, window_bounds = array<i64: 4, 8, 8>}, {transform_indices = @transform_1, window_bounds = array<i64: 4, 8, 16>}, {transform_indices = @transform_2, window_bounds = array<i64: 4, 8, 1>}, {pipeline_mode = #tpu.pipeline_mode<synchronous>, transform_indices = @transform_3, window_bounds = array<i64: 16, 96>}, {pipeline_mode = #tpu.pipeline_mode<synchronous>, transform_indices = @transform_4, window_bounds = array<i64: 1, 96>}, {pipeline_mode = #tpu.pipeline_mode<synchronous>, transform_indices = @transform_5, window_bounds = array<i64: 96, 96>}, {pipeline_mode = #tpu.pipeline_mode<synchronous>, transform_indices = @transform_6, window_bounds = array<i64: 1, 96>}, {transform_indices = @transform_7, window_bounds = array<i64: 4, 8, 32>}]} {
    %c0 = arith.constant 0 : index
    %c0_0 = arith.constant 0 : index
    %c0_1 = arith.constant 0 : index
    %0 = vector.load %arg2[%c0, %c0_0, %c0_1] : memref<4x8x16xf32, #tpu.memory_space<vmem>>, vector<4x8x16xf32>
    %c0_2 = arith.constant 0 : index
    %c0_3 = arith.constant 0 : index
    %c0_4 = arith.constant 0 : index
    %1 = vector.load %arg3[%c0_2, %c0_3, %c0_4] : memref<4x8x1xf32, #tpu.memory_space<vmem>>, vector<4x8x1xf32>
    %2 = vector.broadcast %1 : vector<4x8x1xf32> to vector<4x8x16xf32>
    %3 = arith.mulf %0, %2 : vector<4x8x16xf32>
    %4 = vector.shape_cast %0 : vector<4x8x16xf32> to vector<32x16xf32>
    %5 = vector.shape_cast %3 : vector<4x8x16xf32> to vector<32x16xf32>
    %c0_5 = arith.constant 0 : index
    %c0_6 = arith.constant 0 : index
    %6 = vector.load %arg4[%c0_5, %c0_6] : memref<16x96xf32, #tpu.memory_space<vmem>>, vector<16x96xf32>
    %c0_7 = arith.constant 0 : index
    %c0_8 = arith.constant 0 : index
    %7 = vector.load %arg5[%c0_7, %c0_8] : memref<1x96xf32, #tpu.memory_space<vmem>>, vector<1x96xf32>
    %8 = vector.extract_strided_slice %6 {offsets = [0, 0], sizes = [16, 32], strides = [1, 1]} : vector<16x96xf32> to vector<16x32xf32>
    %cst = arith.constant dense<0.000000e+00> : vector<32x32xf32>
    %9 = tpu.matmul %4, %8, %cst {dimension_numbers = #tpu.dot_dimension_numbers<[1], [0], [0], [1], [0, 0, 1, 1], [], []>} : vector<32x16xf32>, vector<16x32xf32>, vector<32x32xf32> -> vector<32x32xf32>
    %10 = vector.extract_strided_slice %7 {offsets = [0, 0], sizes = [1, 32], strides = [1, 1]} : vector<1x96xf32> to vector<1x32xf32>
    %11 = vector.broadcast %10 : vector<1x32xf32> to vector<32x32xf32>
    %12 = arith.addf %9, %11 : vector<32x32xf32>
    %cst_9 = arith.constant 0.000000e+00 : f32
    %13 = vector.broadcast %cst_9 : f32 to vector<32x32xf32>
    %14 = arith.maximumf %12, %13 : vector<32x32xf32>
    %15 = vector.extract_strided_slice %6 {offsets = [0, 32], sizes = [16, 64], strides = [1, 1]} : vector<16x96xf32> to vector<16x64xf32>
    %cst_10 = arith.constant dense<0.000000e+00> : vector<32x64xf32>
    %16 = tpu.matmul %5, %15, %cst_10 {dimension_numbers = #tpu.dot_dimension_numbers<[1], [0], [0], [1], [0, 0, 1, 1], [], []>} : vector<32x16xf32>, vector<16x64xf32>, vector<32x64xf32> -> vector<32x64xf32>
    %17 = vector.shape_cast %16 : vector<32x64xf32> to vector<4x8x64xf32>
    %c0_11 = arith.constant 0 : index
    %c0_12 = arith.constant 0 : index
    %c0_13 = arith.constant 0 : index
    %18 = vector.load %arg1[%c0_11, %c0_12, %c0_13] : memref<4x8x8xf32, #tpu.memory_space<vmem>>, vector<4x8x8xf32>
    %cst_14 = arith.constant dense<0.000000e+00> : vector<4x8x64xf32>
    %19 = tpu.matmul %18, %17, %cst_14 {dimension_numbers = #tpu.dot_dimension_numbers<[2], [1], [1], [2], [0, 0, 0, 1, 1, 2], [0], [0]>} : vector<4x8x8xf32>, vector<4x8x64xf32>, vector<4x8x64xf32> -> vector<4x8x64xf32>
    %20 = vector.shape_cast %19 : vector<4x8x64xf32> to vector<32x64xf32>
    %21 = vector.extract_strided_slice %20 {offsets = [0, 0], sizes = [32, 32], strides = [1, 1]} : vector<32x64xf32> to vector<32x32xf32>
    %22 = vector.extract_strided_slice %7 {offsets = [0, 32], sizes = [1, 32], strides = [1, 1]} : vector<1x96xf32> to vector<1x32xf32>
    %23 = vector.broadcast %22 : vector<1x32xf32> to vector<32x32xf32>
    %24 = arith.addf %21, %23 : vector<32x32xf32>
    %cst_15 = arith.constant 0.000000e+00 : f32
    %25 = vector.broadcast %cst_15 : f32 to vector<32x32xf32>
    %26 = arith.maximumf %24, %25 : vector<32x32xf32>
    %27 = vector.extract_strided_slice %20 {offsets = [0, 32], sizes = [32, 32], strides = [1, 1]} : vector<32x64xf32> to vector<32x32xf32>
    %28 = vector.extract_strided_slice %16 {offsets = [0, 32], sizes = [32, 32], strides = [1, 1]} : vector<32x64xf32> to vector<32x32xf32>
    %29 = arith.addf %27, %28 : vector<32x32xf32>
    %30 = vector.extract_strided_slice %7 {offsets = [0, 64], sizes = [1, 32], strides = [1, 1]} : vector<1x96xf32> to vector<1x32xf32>
    %31 = vector.broadcast %30 : vector<1x32xf32> to vector<32x32xf32>
    %32 = arith.addf %29, %31 : vector<32x32xf32>
    %cst_16 = arith.constant 0.000000e+00 : f32
    %33 = vector.broadcast %cst_16 : f32 to vector<32x32xf32>
    %34 = arith.maximumf %32, %33 : vector<32x32xf32>
    %35 = tpu.concatenate %14, %26, %34 in 1 : vector<32x32xf32>, vector<32x32xf32>, vector<32x32xf32> -> vector<32x96xf32>
    %c0_17 = arith.constant 0 : index
    %c0_18 = arith.constant 0 : index
    %36 = vector.load %arg6[%c0_17, %c0_18] : memref<96x96xf32, #tpu.memory_space<vmem>>, vector<96x96xf32>
    %cst_19 = arith.constant dense<0.000000e+00> : vector<32x96xf32>
    %37 = tpu.matmul %35, %36, %cst_19 {dimension_numbers = #tpu.dot_dimension_numbers<[1], [0], [0], [1], [0, 0, 1, 1], [], []>} : vector<32x96xf32>, vector<96x96xf32>, vector<32x96xf32> -> vector<32x96xf32>
    %c0_20 = arith.constant 0 : index
    %c0_21 = arith.constant 0 : index
    %38 = vector.load %arg7[%c0_20, %c0_21] : memref<1x96xf32, #tpu.memory_space<vmem>>, vector<1x96xf32>
    %39 = vector.broadcast %38 : vector<1x96xf32> to vector<32x96xf32>
    %40 = arith.addf %37, %39 : vector<32x96xf32>
    %41 = vector.extract_strided_slice %40 {offsets = [0, 0], sizes = [32, 32], strides = [1, 1]} : vector<32x96xf32> to vector<32x32xf32>
    %cst_22 = arith.constant 0.176776692 : f32
    %42 = vector.broadcast %cst_22 : f32 to vector<32x32xf32>
    %43 = arith.mulf %41, %42 : vector<32x32xf32>
    %44 = vector.shape_cast %43 : vector<32x32xf32> to vector<4x8x32xf32>
    %45 = vector.extract_strided_slice %40 {offsets = [0, 32], sizes = [32, 32], strides = [1, 1]} : vector<32x96xf32> to vector<32x32xf32>
    %46 = vector.shape_cast %45 : vector<32x32xf32> to vector<4x8x32xf32>
    %47 = vector.extract_strided_slice %40 {offsets = [0, 64], sizes = [32, 32], strides = [1, 1]} : vector<32x96xf32> to vector<32x32xf32>
    %48 = vector.shape_cast %47 : vector<32x32xf32> to vector<4x8x32xf32>
    %cst_23 = arith.constant dense<0.000000e+00> : vector<4x8x8xf32>
    %49 = tpu.matmul %44, %46, %cst_23 {dimension_numbers = #tpu.dot_dimension_numbers<[2], [2], [1], [1], [0, 0, 0, 1, 1, 1], [0], [0]>} : vector<4x8x32xf32>, vector<4x8x32xf32>, vector<4x8x8xf32> -> vector<4x8x8xf32>
    %cst_24 = arith.constant dense<0xFF800000> : vector<4x8xf32>
    %50 = vector.multi_reduction <maximumf>, %49, %cst_24 [2] : vector<4x8x8xf32> to vector<4x8xf32>
    %51 = vector.shape_cast %50 : vector<4x8xf32> to vector<4x8x1xf32>
    %52 = vector.broadcast %51 : vector<4x8x1xf32> to vector<4x8x8xf32>
    %53 = arith.subf %49, %52 : vector<4x8x8xf32>
    %54 = math.exp %53 : vector<4x8x8xf32>
    %cst_25 = arith.constant dense<0.000000e+00> : vector<4x8xf32>
    %55 = vector.multi_reduction <add>, %54, %cst_25 [2] : vector<4x8x8xf32> to vector<4x8xf32>
    %56 = vector.shape_cast %55 : vector<4x8xf32> to vector<4x8x1xf32>
    %57 = vector.broadcast %56 : vector<4x8x1xf32> to vector<4x8x8xf32>
    %58 = arith.divf %54, %57 : vector<4x8x8xf32>
    %cst_26 = arith.constant dense<0.000000e+00> : vector<4x8x32xf32>
    %59 = tpu.matmul %58, %48, %cst_26 {dimension_numbers = #tpu.dot_dimension_numbers<[2], [1], [1], [2], [0, 0, 0, 1, 1, 2], [0], [0]>} : vector<4x8x8xf32>, vector<4x8x32xf32>, vector<4x8x32xf32> -> vector<4x8x32xf32>
    %c0_27 = arith.constant 0 : index
    %c0_28 = arith.constant 0 : index
    %c0_29 = arith.constant 0 : index
    %60 = vector.load %arg8[%c0_27, %c0_28, %c0_29] : memref<4x8x32xf32, #tpu.memory_space<vmem>>, vector<4x8x32xf32>
    tpu.vector_store %arg8[%c0_27, %c0_28, %c0_29], %59 {strides = array<i32>} : memref<4x8x32xf32, #tpu.memory_space<vmem>>, vector<4x8x32xf32>,
    return
  }
  func.func @transform_0(%arg0: i32) -> (i32, i32, i32) {
    %c0_i32 = arith.constant 0 : i32
    %c0_i32_0 = arith.constant 0 : i32
    %c0_i32_1 = arith.constant 0 : i32
    return %arg0, %c0_i32, %c0_i32_0 : i32, i32, i32
  }
  func.func @transform_1(%arg0: i32) -> (i32, i32, i32) {
    %c0_i32 = arith.constant 0 : i32
    %c0_i32_0 = arith.constant 0 : i32
    %c0_i32_1 = arith.constant 0 : i32
    return %arg0, %c0_i32, %c0_i32_0 : i32, i32, i32
  }
  func.func @transform_2(%arg0: i32) -> (i32, i32, i32) {
    %c0_i32 = arith.constant 0 : i32
    %c0_i32_0 = arith.constant 0 : i32
    %c0_i32_1 = arith.constant 0 : i32
    return %arg0, %c0_i32, %c0_i32_0 : i32, i32, i32
  }
  func.func @transform_3(%arg0: i32) -> (i32, i32) {
    %c0_i32 = arith.constant 0 : i32
    %c0_i32_0 = arith.constant 0 : i32
    %c0_i32_1 = arith.constant 0 : i32
    return %c0_i32, %c0_i32_0 : i32, i32
  }
  func.func @transform_4(%arg0: i32) -> (i32, i32) {
    %c0_i32 = arith.constant 0 : i32
    %c0_i32_0 = arith.constant 0 : i32
    %c0_i32_1 = arith.constant 0 : i32
    return %c0_i32, %c0_i32_0 : i32, i32
  }
  func.func @transform_5(%arg0: i32) -> (i32, i32) {
    %c0_i32 = arith.constant 0 : i32
    %c0_i32_0 = arith.constant 0 : i32
    %c0_i32_1 = arith.constant 0 : i32
    return %c0_i32, %c0_i32_0 : i32, i32
  }
  func.func @transform_6(%arg0: i32) -> (i32, i32) {
    %c0_i32 = arith.constant 0 : i32
    %c0_i32_0 = arith.constant 0 : i32
    %c0_i32_1 = arith.constant 0 : i32
    return %c0_i32, %c0_i32_0 : i32, i32
  }
  func.func @transform_7(%arg0: i32) -> (i32, i32, i32) {
    %c0_i32 = arith.constant 0 : i32
    %c0_i32_0 = arith.constant 0 : i32
    %c0_i32_1 = arith.constant 0 : i32
    return %arg0, %c0_i32, %c0_i32_0 : i32, i32, i32
  }
}

</mosaic_0001>

<bundles_post_ra>
// kernel: tpu_custom_call.1
= control target key start
LH: loop header
LB: loop body
LE: loop exit
PB: predicated region body
PF: predicated region fallthrough
CT: control target
= control target key end

     0   :  { %12 = vsyncpa [#allocation3], 0  ;;  %s1569_s0 = inlined_call_operand.vmem [shape: f32[16,8,8], index: 0, kind: input, shape index: {}]   ;;  %s1570_s1 = inlined_call_operand.vmem [shape: f32[16,8,16], index: 1, kind: input, shape index: {}]   ;;  %s1571_s2 = inlined_call_operand.vmem [shape: f32[16,8,1], index: 2, kind: input, shape index: {}]   ;;  %s1572_s3 = inlined_call_operand.vmem [shape: f32[16,96], index: 3, kind: input, shape index: {}]   ;;  %s1573_s4 = inlined_call_operand.vmem [shape: f32[1,96], index: 4, kind: input, shape index: {}]   ;;  %s1574_s5 = inlined_call_operand.vmem [shape: f32[96,96], index: 5, kind: input, shape index: {}]   ;;  %s1575_s6 = inlined_call_operand.vmem [shape: f32[1,96], index: 6, kind: input, shape index: {}]   ;;  %s1576_s7 = inlined_call_operand.hbm [shape: f32[16,8,32], index: 7, kind: output, shape index: {}]  }
   0x1   :  { %14 = vsyncpa [#allocation3 + $0x1], 0  ;;  %s1335_s24 = smov 0   ;;  %s1337_s25 = smov 0  }
   0x2   :  { %s1339_s26 = smov 0   ;;  %s1341_s27 = smov 0  }
   0x3 LB: > { %s1356_s28 = sadd.s32 4294967295, %s1287_s27   ;;  %s1099_s29 = sadd.s32 4294967294, %s1287_s27   ;;  %s1287_s27 = sphi %s1341_s27, %s1582_s27   ;;  %s1283_s26 = sphi %s1339_s26, %s1581_s26   ;;  %s1279_s25 = sphi %s1337_s25, %s1580_s25   ;;  %s1275_s24 = sphi %s1335_s24, %s1579_s24  }
   0x4   : > { %s1360_s30 = sadd.s32 1, %s1287_s27   ;;  %s189_s8 = sadd.s32 1, %s1283_s26 }
   0x5   : > { %s186_s9 = ssub.s32 %s1287_s27, %s1360_s30  ;;  %p199_p0 = scmp.ne.s32.totalorder %s1283_s26, %s1279_s25 }
   0x6   : > { %p187_p1 = scmp.eq.s32.totalorder %s186_s9, 0  ;;  %p200_p2 = scmp.eq.s32.totalorder %s1356_s28, 3 }
   0x7   : > { %p205_p3 = scmp.ne.s32.totalorder %s1279_s25, %s1275_s24  ;;  %p206_p4 = scmp.eq.s32.totalorder %s1099_s29, 3 }
   0x8   : > { %s1371_s10 = scalar_select %p187_p1, %s1283_s26, %s189_s8  }
   0x9   : > { %p1373_p5 = por %p200_p2, %p199_p0  ;;  %p1377_p6 = por %p206_p4, %p205_p3 }
   0xa   : > { %p1102_p7 = scmp.ge.s32.totalorder %s1287_s27, 1  ;;  %p263_p8 = scmp.lt.s32.totalorder %s1287_s27, 5 }
   0xc   : > { %p264_p9 = pnand %p1102_p7, %p263_p8 }
   0xd   : > { %s1104_s17 = sshll.u32 (!%p264_p9), %s1356_s28, 2  ;;  %s1290_s18 = smov (!%p264_p9), 96  }
   0xe   : > { %267 = sbr.rel (%p264_p9) target bundleno = 1326 (0x52e), region = 48  ;;  %p306_p10 = scmp.lt.s32.totalorder (!%p264_p9), %s1104_s17, 15 }
  0x13   : > { %v356_v0 = vld [vmem:[%s1572_s3] sm:$0xff]  ;;  %v357_v1 = vld [vmem:[%s1572_s3 + $0x8] sm:$0xff]  ;;  %v1289_v3 = vmov 0   ;;  %s1584_s17 = smov (!%p306_p10, %s1104_s17), 15  ;;  %vm362_vm0 = vcmask 130048   ;;  %vm461_vm1 = vcmask 64512  }
  0x14   : > { %v1189_v2 = vpack.i.bf16 %v356_v0, %v357_v1  ;;  %1195 = vset.pattern.permute.xlu1 %v1289_v3  ;;  %1194 = vset.pattern.permute.xlu0 %v1289_v3  ;;  %s1391_s19 = sshll.u32 %s1584_s17, 3  ;;  %v1412_v23 = vld [vmem:[%s1573_s4] ss:$0 sm:$0xff]  ;;  %s1291_s17 = smov 32   ;;  %v630_v57 = vld [vmem:[%s1574_s5 + $0x58] sm:$0xff]  ;;  %v629_v58 = vld [vmem:[%s1574_s5 + $0x50] sm:$0xff] }
  0x15   : > { %1196 = vset.pattern.permute.xlu2 %v1289_v3  ;;  %389 = vmatpush.msra.mxu0 %v357_v1  ;;  %s321_s22 = scalar_lea.vmem %s1571_s2, %s1391_s19  ;;  %s315_s8 = scalar_lea.vmem %s1570_s1, %s1391_s19  ;;  %v628_v59 = vld [vmem:[%s1574_s5 + $0x48] sm:$0xff]  ;;  %v627_v60 = vld [vmem:[%s1574_s5 + $0x40] sm:$0xff]  ;;  %v626_v61 = vld [vmem:[%s1574_s5 + $0x38] sm:$0xff]  ;;  %vm614_vm2 = vcmask 523264   ;;  %vm609_vm3 = vcmask 261120   ;;  %vm635_vm4 = vcmask 785408  }
  0x16   : > { %1190 = vrot.lane.b32.xlu0 %v1189_v2, %s1290_s18  ;;  %v329_v4 = vld [vmem:[%s321_s22 + $0x8] sm:$0xff]  ;;  %v328_v5 = vld [vmem:[%s321_s22] sm:$0xff]  ;;  %v331_v6 = vld [vmem:[%s321_s22 + $0x18] sm:$0xff]  ;;  %s309_s16 = scalar_lea.vmem %s1569_s0, %s1391_s19  ;;  %s302_s19 = sand.u32 1, %s1279_s25  }
  0x17   : > { %390 = vmatpush.msra.mxu0 %v356_v0  ;;  %339 = vperm.xlu1 %1195, %v329_v4   ;;  %v330_v7 = vld [vmem:[%s321_s22 + $0x10] sm:$0xff]  ;;  %v324_v8 = vld [vmem:[%s315_s8] sm:$0xff]  ;;  %v325_v9 = vld [vmem:[%s315_s8 + $0x8] sm:$0xff]  ;;  %s1103_s20 = sshll.u32 %s302_s19, 5  ;;  %s1143_s22 = sshll.u32 %s1356_s28, 5 }
  0x18   : > { %349 = vperm.xlu2 %1196, %v331_v6   ;;  %1110 = vmatmul.msk.f32.vlgmr.msra.gmra.mxu0 %vm362_vm0, %v324_v8  ;;  %v326_v10 = vld [vmem:[%s315_s8 + $0x10] sm:$0xff]  ;;  %v327_v13 = vld [vmem:[%s315_s8 + $0x18] sm:$0xff]  ;;  %v457_v24 = vld [vmem:[%s309_s16] sm:$0xff]  ;;  %s304_s21 = scalar_lea.vmem [#allocation2], %s1103_s20  ;;  %s1009_s8 = scalar_lea.hbm %s1576_s7, %s1143_s22 }
  0x19   : > { %v458_v26 = vld [vmem:[%s309_s16 + $0x8] sm:$0xff]  ;;  %v459_v28 = vld [vmem:[%s309_s16 + $0x10] sm:$0xff]  ;;  %v460_v30 = vld [vmem:[%s309_s16 + $0x18] sm:$0xff]  ;;  %s1010_s9 = sshll.u32 %s304_s21, 4  ;;  %s1012_s13 = sshll.u32 %s1009_s8, 4  ;;  %s1011_s9 = int_to_ptr.vmem [resolvable:$true] %s1010_s9  ;;  %s1013_s13 = int_to_ptr.hbm [resolvable:$true] %s1012_s13 }
  0x1a   : > { %v625_v62 = vld [vmem:[%s1574_s5 + $0x30] sm:$0xff]  ;;  %v624_v63 = vld [vmem:[%s1574_s5 + $0x28] sm:$0xff]  ;;  %v623_v0 = vld [vmem:[%s1574_s5 + $0x20] sm:$0xff]  ;;  %s998_s14 = scalar_lea.sflag [#allocation3], %s302_s19  ;;  %s1239_s28 = sshra.s32 %s1013_s13, 4  ;;  %s1240_s28 = int_to_ptr.hbm [resolvable:$true] %s1239_s28 }
  0x1b   : > { %v622_v1 = vld [vmem:[%s1574_s5 + $0x18] sm:$0xff]  ;;  %v621_v2 = vld [vmem:[%s1574_s5 + $0x10] sm:$0xff]  ;;  %v620_v3 = vld [vmem:[%s1574_s5 + $0x8] sm:$0xff]  ;;  %s1241_s15 = scalar_lea.hbm %s1240_s28, 32  ;;  %p1246_p0 = scmp.lt.s32.totalorder %s1240_s28, %s1576_s7 }
  0x1c   : > { %v619_v4 = vld [vmem:[%s1574_s5] sm:$0xff]  ;;  %p1242_p11 = scmp.ne.s32.totalorder %s1240_s28, %s1241_s15 }
  0x1e   : > { %334 = vperm.xlu0 %1194, %v328_v5   ;;  %p1243_p12 = pnand %p1242_p11, %p1373_p5 }
  0x1f   : > { %344 = vperm.xlu1 %1195, %v330_v7  }
  0x20   : > { %1111 = vmatmul.msk.f32.gmra.mxu0 %vm362_vm0, %v325_v9  ;;  %554 = vrot.lane.b32.xlu2 %v1412_v23, %s1290_s18  ;;  %p1244_p13 = pneg %p1243_p12 }
  0x28   : > { %1112 = vmatmul.msk.f32.gmra.mxu0 %vm362_vm0, %v326_v10 }
  0x30   : > { %1113 = vmatmul.msk.f32.gmra.mxu0 %vm362_vm0, %v327_v13 }
  0x72   : > { %v350_v21 = vpop.permute.xlu2 %349 }
  0x73   : > { %v355_v22 = vmul.f32 %v350_v21, %v327_v13 }
  0x7a   : > { %v555_v32 = vpop.permute.xlu2 %554 }
  0x88   : > { %v1191_v11 = vpop.permute.xlu0 %1190 }
  0x89   : > { %v1192_v12 = vunpack.i.l.bf16 %v1191_v11  ;;  %v1193_v14 = vunpack.i.h.bf16 %v1191_v11  ;;  %v340_v17 = vpop.permute.xlu1 %339 }
  0x8a   : > { %v353_v18 = vmul.f32 %v340_v17, %v325_v9 }
  0x8b   : > { %442 = vmatpush.msra.mxu1 %v1192_v12 }
  0x8d   : > { %443 = vmatpush.msra.mxu1 %v1193_v14 }
  0x90   : > { %v335_v15 = vpop.permute.xlu0 %334 }
  0x91   : > { %v352_v16 = vmul.f32 %v335_v15, %v324_v8  ;;  %v345_v19 = vpop.permute.xlu1 %344 }
  0x92   : > { %v354_v20 = vmul.f32 %v345_v19, %v326_v10 }
  0x93   : > { %1114 = vmatmul.msk.f32.vlgmr.msra.gmra.mxu1 %vm362_vm0, %v352_v16 }
  0x95   : > { %v392_v5 = vpop.f32.mrf.mxu0 }
  0x96   : > { %v393_v6 = vadd.f32 %v1412_v23, %v392_v5 }
  0x98   : > { %v404_v8 = vmax.f32 %v393_v6, 0.0 }
  0x9b   : > { %1115 = vmatmul.msk.f32.gmra.mxu1 %vm362_vm0, %v353_v18 }
  0x9d   : > { %v395_v7 = vpop.f32.mrf.mxu0 }
  0x9e   : > { %v396_v11 = vadd.f32 %v1412_v23, %v395_v7 }
  0xa0   : > { %v405_v14 = vmax.f32 %v396_v11, 0.0 }
  0xa3   : > { %1116 = vmatmul.msk.f32.gmra.mxu1 %vm362_vm0, %v354_v20 }
  0xa5   : > { %v398_v15 = vpop.f32.mrf.mxu0 }
  0xa6   : > { %v399_v18 = vadd.f32 %v1412_v23, %v398_v15 }
  0xa8   : > { %v406_v21 = vmax.f32 %v399_v18, 0.0 }
  0xab   : > { %1117 = vmatmul.msk.f32.gmra.mxu1 %vm362_vm0, %v355_v22 }
  0xad   : > { %v401_v22 = vpop.f32.mrf.mxu0 }
 0x110   : > { %v445_v25 = vpop.f32.mrf.mxu1 }
 0x111   : > { %480 = vmatpush.msra.mxu3 %v445_v25 }
 0x112   : > { %1118 = vmatmul.msk.f32.vlgmr.msra.gmra.mxu3 %vm461_vm1, %v457_v24 }
 0x118   : > { %v448_v27 = vpop.f32.mrf.mxu1 }
 0x119   : > { %503 = vmatpush.msrb.mxu3 %v448_v27 }
 0x11a   : > { %1119 = vmatmul.msk.f32.vlgmr.msrb.gmra.mxu3 %vm461_vm1, %v458_v26 }
 0x120   : > { %v451_v29 = vpop.f32.mrf.mxu1 }
 0x121   : > { %526 = vmatpush.msra.mxu2 %v451_v29 }
 0x122   : > { %1120 = vmatmul.msk.f32.vlgmr.msra.gmra.mxu2 %vm461_vm1, %v459_v28 }
 0x123   : > { %652 = vmatpush.msrb.mxu2 %v630_v57 }
 0x125   : > { %653 = vmatpush.msrb.mxu2 %v629_v58 }
 0x127   : > { %654 = vmatpush.msrb.mxu2 %v628_v59 }
 0x128   : > { %v454_v31 = vpop.f32.mrf.mxu1 }
 0x129   : > { %549 = vmatpush.msra.mxu3 %v454_v31  ;;  %655 = vmatpush.msrb.mxu2 %v627_v60 }
 0x12a   : > { %1121 = vmatmul.msk.f32.vlgmr.msra.gmra.mxu3 %vm461_vm1, %v460_v30 }
 0x12b   : > { %656 = vmatpush.msrb.mxu2 %v626_v61 }
 0x12d   : > { %657 = vmatpush.msrb.mxu2 %v625_v62 }
 0x12f   : > { %658 = vmatpush.msrb.mxu2 %v624_v63 }
 0x131   : > { %659 = vmatpush.msrb.mxu2 %v623_v0 }
 0x133   : > { %660 = vmatpush.msrb.mxu2 %v622_v1 }
 0x135   : > { %661 = vmatpush.msrb.mxu2 %v621_v2 }
 0x137   : > { %662 = vmatpush.msrb.mxu2 %v620_v3 }
 0x139   : > { %663 = vmatpush.msrb.mxu2 %v619_v4 }
 0x195   : > { %v482_v33 = vpop.f32.mrf.mxu3 }
 0x196   : > { %v557_v34 = vadd.f32 %v555_v32, %v482_v33  ;;  %v565_v35 = vadd.f32 %v482_v33, %v445_v25  ;;  %v402_v25 = vadd.f32 %v1412_v23, %v401_v22  ;;  %v1208_v23 = vld [vmem:[%s1575_s6] ss:$0 sm:$0xff] }
 0x198   : > { %v561_v36 = vmax.f32 %v557_v34, 0.0  ;;  %v569_v37 = vadd.f32 %v565_v35, %v555_v32 }
 0x19a   : > { %581 = vrot.lane.b32.xlu1 %v561_v36, %s1291_s17  ;;  %v573_v38 = vmax.f32 %v569_v37, 0.0 }
 0x19c   : > { %597 = vrot.lane.b32.xlu2 %v573_v38, %s1291_s17 }
 0x19d   : > { %v505_v39 = vpop.f32.mrf.mxu3 }
 0x19e   : > { %v558_v40 = vadd.f32 %v555_v32, %v505_v39  ;;  %v566_v41 = vadd.f32 %v505_v39, %v448_v27 }
 0x1a0   : > { %v562_v42 = vmax.f32 %v558_v40, 0.0  ;;  %v570_v43 = vadd.f32 %v566_v41, %v555_v32 }
 0x1a2   : > { %583 = vrot.lane.b32.xlu0 %v562_v42, %s1291_s17  ;;  %v574_v44 = vmax.f32 %v570_v43, 0.0 }
 0x1a4   : > { %599 = vrot.lane.b32.xlu1 %v574_v44, %s1291_s17 }
 0x1a5   : > { %v528_v45 = vpop.f32.mrf.mxu2 }
 0x1a6   : > { %v559_v46 = vadd.f32 %v555_v32, %v528_v45  ;;  %v567_v47 = vadd.f32 %v528_v45, %v451_v29  ;;  %v407_v29 = vmax.f32 %v402_v25, 0.0 }
 0x1a8   : > { %v563_v48 = vmax.f32 %v559_v46, 0.0  ;;  %v571_v49 = vadd.f32 %v567_v47, %v555_v32 }
 0x1aa   : > { %585 = vrot.lane.b32.xlu2 %v563_v48, %s1291_s17  ;;  %v575_v50 = vmax.f32 %v571_v49, 0.0 }
 0x1ac   : > { %601 = vrot.lane.b32.xlu0 %v575_v50, %s1291_s17 }
 0x1ad   : > { %v551_v51 = vpop.f32.mrf.mxu3 }
 0x1ae   : > { %v560_v52 = vadd.f32 %v555_v32, %v551_v51  ;;  %v568_v53 = vadd.f32 %v551_v51, %v454_v31 }
 0x1b0   : > { %v564_v54 = vmax.f32 %v560_v52, 0.0  ;;  %v572_v55 = vadd.f32 %v568_v53, %v555_v32 }
 0x1b2   : > { %587 = vrot.lane.b32.xlu1 %v564_v54, %s1291_s17  ;;  %v576_v56 = vmax.f32 %v572_v55, 0.0 }
 0x1b4   : > { %603 = vrot.lane.b32.xlu2 %v576_v56, %s1291_s17 }
 0x1f6   : > { %v598_v10 = vpop.permute.xlu2 %597 }
 0x204   : > { %v586_v24 = vpop.permute.xlu2 %585 }
 0x205   : > { %v612_v26 = vsel %vm609_vm3, %v406_v21, %v586_v24 }
 0x20c   : > { %v582_v9 = vpop.permute.xlu1 %581 }
 0x20d   : > { %v610_v12 = vsel %vm609_vm3, %v404_v8, %v582_v9 }
 0x20e   : > { %v615_v13 = vsel %vm614_vm2, %v610_v12, %v598_v10  ;;  %v604_v31 = vpop.permute.xlu2 %603 }
 0x20f   : > { %1122 = vmatmul.msk.f32.vlgmr.msrb.gmra.mxu2 %vm635_vm4, %v615_v13 }
 0x214   : > { %v584_v16 = vpop.permute.xlu0 %583 }
 0x215   : > { %v611_v17 = vsel %vm609_vm3, %v405_v14, %v584_v16 }
 0x216   : > { %v600_v19 = vpop.permute.xlu1 %599 }
 0x217   : > { %v616_v20 = vsel %vm614_vm2, %v611_v17, %v600_v19 }
 0x218   : > { %1123 = vmatmul.msk.f32.gmra.mxu2 %vm635_vm4, %v616_v20 }
 0x21e   : > { %v602_v27 = vpop.permute.xlu0 %601 }
 0x21f   : > { %v617_v28 = vsel %vm614_vm2, %v612_v26, %v602_v27 }
 0x220   : > { %1124 = vmatmul.msk.f32.gmra.mxu2 %vm635_vm4, %v617_v28 }
 0x224   : > { %v588_v30 = vpop.permute.xlu1 %587 }
 0x225   : > { %v613_v32 = vsel %vm609_vm3, %v407_v29, %v588_v30 }
 0x226   : > { %v618_v33 = vsel %vm614_vm2, %v613_v32, %v604_v31 }
 0x228   : > { %1125 = vmatmul.msk.f32.gmra.mxu2 %vm635_vm4, %v618_v33 }
 0x292   : > { %v665_v34 = vpop.f32.mrf.mxu2 }
 0x293   : > { %v1479_v35 = vadd.f32 %v1208_v23, %v665_v34 }
 0x295   : > { %682 = vrot.lane.b32.xlu0 %v1479_v35, %s1290_s18  ;;  %v677_v45 = vmul.f32 0.17677669, %v1479_v35 }
 0x29b   : > { %v668_v36 = vpop.f32.mrf.mxu2 }
 0x29c   : > { %v1483_v37 = vadd.f32 %v1208_v23, %v668_v36 }
 0x29e   : > { %710 = vrot.lane.b32.xlu1 %v1483_v37, %s1290_s18  ;;  %v1197_v38 = vpack.i.bf16 %v1483_v37, %v1479_v35  ;;  %v678_v48 = vmul.f32 0.17677669, %v1483_v37 }
 0x2a3   : > { %v671_v39 = vpop.f32.mrf.mxu2 }
 0x2a4   : > { %v1489_v40 = vadd.f32 %v1208_v23, %v671_v39 }
 0x2a6   : > { %738 = vrot.lane.b32.xlu2 %v1489_v40, %s1290_s18  ;;  %v679_v49 = vmul.f32 0.17677669, %v1489_v40 }
 0x2ab   : > { %v674_v41 = vpop.f32.mrf.mxu2 }
 0x2ac   : > { %v675_v42 = vadd.f32 %v1208_v23, %v674_v41 }
 0x2ae   : > { %766 = vrot.lane.b32.xlu0 %v675_v42, %s1290_s18  ;;  %v1202_v43 = vpack.i.bf16 %v675_v42, %v1489_v40  ;;  %v680_v51 = vmul.f32 0.17677669, %v675_v42  ;;  %s1292_s18 = smov 64  }
 0x300   : > { %v739_v47 = vpop.permute.xlu2 %738 }
 0x307   : > { %v683_v44 = vpop.permute.xlu0 %682 }
 0x308   : > { %1126 = vmatpush.xpose.msk.msrb.mxu3 %vm609_vm3, %v683_v44 }
 0x30b   : > { %1127 = vmatmul.msk.f32.vlgmr.msrb.gmra.mxu3 %vm609_vm3, %v677_v45 }
 0x310   : > { %v711_v46 = vpop.permute.xlu1 %710 }
 0x311   : > { %1128 = vmatpush.xpose.msk.msra.mxu3 %vm609_vm3, %v711_v46 }
 0x314   : > { %1129 = vmatmul.msk.f32.vlgmr.msra.gmra.mxu3 %vm609_vm3, %v678_v48 }
 0x315   : > { %1130 = vmatpush.xpose.msk.msrb.mxu3 %vm609_vm3, %v739_v47 }
 0x31c   : > { %1131 = vmatmul.msk.f32.vlgmr.msrb.gmra.mxu3 %vm609_vm3, %v679_v49 }
 0x320   : > { %v767_v50 = vpop.permute.xlu0 %766 }
 0x321   : > { %1132 = vmatpush.xpose.msk.msrb.mxu0 %vm609_vm3, %v767_v50 }
 0x324   : > { %1133 = vmatmul.msk.f32.vlgmr.msrb.gmra.mxu0 %vm609_vm3, %v680_v51 }
 0x38e   : > { %v706_v52 = vpop.f32.mrf.mxu3 }
 0x38f   : > { %v793_v53 = vsel %vm461_vm1, %v706_v52, -inf }
 0x390   : > { %794 = vmax.xlane.f32.xlu1 %v793_v53 }
 0x397   : > { %v734_v54 = vpop.f32.mrf.mxu3 }
 0x398   : > { %v796_v55 = vsel %vm461_vm1, %v734_v54, -inf }
 0x399   : > { %797 = vmax.xlane.f32.xlu2 %v796_v55 }
 0x39f   : > { %v762_v56 = vpop.f32.mrf.mxu3 }
 0x3a0   : > { %v799_v57 = vsel %vm461_vm1, %v762_v56, -inf }
 0x3a1   : > { %v790_v58 = vpop.f32.mrf.mxu0  ;;  %800 = vmax.xlane.f32.xlu0 %v799_v57 }
 0x3a2   : > { %v802_v59 = vsel %vm461_vm1, %v790_v58, -inf }
 0x3a3   : > { %803 = vmax.xlane.f32.xlu2 %v802_v59 }
 0x403   : > { %v795_v60 = vpop.xlane.xlu1 %794 }
 0x404   : > { %v805_v61 = vsub.f32 %v706_v52, %v795_v60 }
 0x406   : > { %v809_v62 = vmul.f32 1.442695, %v805_v61 }
 0x408   : > { %1209 = vpow2.f32 %v809_v62 }
 0x40c   : > { %v798_v63 = vpop.xlane.xlu2 %797 }
 0x40d   : > { %v806_v0 = vsub.f32 %v734_v54, %v798_v63 }
 0x40e   : > { %v1210_v1 = vpop.eup %1209 }
 0x40f   : > { %v811_v2 = vmul.f32 1.442695, %v806_v0  ;;  %v817_v3 = vsel %vm461_vm1, %v1210_v1, 0.0 }
 0x410   : > { %818 = vadd.xlane.f32.xlu1 %v817_v3 }
 0x411   : > { %1211 = vpow2.f32 %v811_v2 }
 0x414   : > { %v801_v4 = vpop.xlane.xlu0 %800 }
 0x415   : > { %v807_v5 = vsub.f32 %v762_v56, %v801_v4 }
 0x416   : > { %v804_v6 = vpop.xlane.xlu2 %803 }
 0x417   : > { %v1511_v7 = vpop.eup %1211  ;;  %v813_v8 = vmul.f32 1.442695, %v807_v5  ;;  %v808_v9 = vsub.f32 %v790_v58, %v804_v6 }
 0x418   : > { %v820_v10 = vsel %vm461_vm1, %v1511_v7, 0.0 }
 0x419   : > { %1213 = vpow2.f32 %v813_v8  ;;  %v815_v11 = vmul.f32 1.442695, %v808_v9  ;;  %821 = vadd.xlane.f32.xlu2 %v820_v10 }
 0x41b   : > { %1215 = vpow2.f32 %v815_v11 }
 0x41f   : > { %v1515_v12 = vpop.eup %1213 }
 0x420   : > { %v823_v13 = vsel %vm461_vm1, %v1515_v12, 0.0 }
 0x421   : > { %v1519_v14 = vpop.eup %1215  ;;  %824 = vadd.xlane.f32.xlu0 %v823_v13 }
 0x422   : > { %v826_v15 = vsel %vm461_vm1, %v1519_v14, 0.0 }
 0x423   : > { %827 = vadd.xlane.f32.xlu1 %v826_v15 }
 0x431   : > { %1198 = vrot.lane.b32.xlu2 %v1197_v38, %s1292_s18 }
 0x435   : > { %1203 = vrot.lane.b32.xlu0 %v1202_v43, %s1292_s18  ;;  %s1245_s18 = scalar_lea.hbm %s1576_s7, 128 }
 0x436   : > { %p1247_p1 = scmp.lt.s32.totalorder %s1245_s18, %s1241_s15 }
 0x438   : > { %p1248_p2 = por %p1247_p1, %p1246_p0 }
 0x43a   : > { %p1249_p3 = pnand %p1248_p2, %p1244_p13 }
 0x483   : > { %v819_v16 = vpop.xlane.xlu1 %818 }
 0x484   : > { %1217 = vrcp.f32 %v819_v16  ;;  %v840_v21 = vand.u32 2147483648, %v819_v16  ;;  %v838_v24 = vand.u32 2147483647, %v819_v16  ;;  %vm834_vm6 = vweird.f32 %v819_v16 }
 0x486   : > { %v841_v26 = vor.u32 1.1754944e-38, %v840_v21  ;;  %vm839_vm8 = vcmp.eq.f32.partialorder %v838_v24, 8.507059e+37 }
 0x48a   : > { %v1218_v17 = vpop.eup %1217 }
 0x48b   : > { %v830_v18 = vmul.f32 %v1218_v17, %v819_v16  ;;  %vm835_vm5 = vweird.f32 %v1218_v17 }
 0x48c   : > { %v822_v19 = vpop.xlane.xlu2 %821  ;;  %vm836_vm7 = vmor %vm834_vm6, %vm835_vm5 }
 0x48d   : > { %v831_v20 = vsub.f32 1.0, %v830_v18  ;;  %1219 = vrcp.f32 %v822_v19  ;;  %v855_v37 = vand.u32 2147483648, %v822_v19  ;;  %v853_v39 = vand.u32 2147483647, %v822_v19 }
 0x48e   : > { %vm849_vm10 = vweird.f32 %v822_v19 }
 0x48f   : > { %v832_v22 = vmul.f32 %v1218_v17, %v831_v20  ;;  %v856_v42 = vor.u32 1.1754944e-38, %v855_v37  ;;  %vm854_vm12 = vcmp.eq.f32.partialorder %v853_v39, 8.507059e+37 }
 0x491   : > { %v833_v25 = vadd.f32 %v1218_v17, %v832_v22 }
 0x493   : > { %v1220_v27 = vpop.eup %1219  ;;  %v837_v28 = vsel %vm836_vm7, %v1218_v17, %v833_v25 }
 0x494   : > { %v845_v29 = vmul.f32 %v1220_v27, %v822_v19  ;;  %v1199_v30 = vpop.permute.xlu2 %1198  ;;  %v825_v31 = vpop.xlane.xlu0 %824  ;;  %v842_v32 = vsel %vm839_vm8, %v841_v26, %v837_v28  ;;  %vm850_vm9 = vweird.f32 %v1220_v27 }
 0x495   : > { %v1201_v33 = vunpack.i.h.bf16 %v1199_v30  ;;  %v1200_v23 = vunpack.i.l.bf16 %v1199_v30  ;;  %1221 = vrcp.f32 %v825_v31  ;;  %v843_v36 = vmul.f32 %v1210_v1, %v842_v32  ;;  %vm851_vm11 = vmor %vm849_vm10, %vm850_vm9 }
 0x496   : > { %v846_v34 = vsub.f32 1.0, %v845_v29  ;;  %v828_v35 = vpop.xlane.xlu1 %827  ;;  %v870_v51 = vand.u32 2147483648, %v825_v31  ;;  %vm864_vm14 = vweird.f32 %v825_v31  ;;  %v868_v53 = vand.u32 2147483647, %v825_v31 }
 0x497   : > { %1223 = vrcp.f32 %v828_v35  ;;  %910 = vmatpush.msrb.mxu1 %v1200_v23  ;;  %936 = vmatpush.msra.mxu3 %v1201_v33  ;;  %v885_v54 = vand.u32 2147483648, %v828_v35  ;;  %v883_v57 = vand.u32 2147483647, %v828_v35  ;;  %vm879_vm2 = vweird.f32 %v828_v35 }
 0x498   : > { %v847_v38 = vmul.f32 %v1220_v27, %v846_v34  ;;  %1134 = vmatmul.msk.f32.vlgmr.msrb.gmra.mxu1 %vm461_vm1, %v843_v36  ;;  %v871_v59 = vor.u32 1.1754944e-38, %v870_v51  ;;  %vm869_vm4 = vcmp.eq.f32.partialorder %v868_v53, 8.507059e+37 }
 0x499   : > { %v886_v61 = vor.u32 1.1754944e-38, %v885_v54  ;;  %vm884_vm6 = vcmp.eq.f32.partialorder %v883_v57, 8.507059e+37 }
 0x49a   : > { %v848_v40 = vadd.f32 %v1220_v27, %v847_v38 }
 0x49b   : > { %v1222_v41 = vpop.eup %1221 }
 0x49c   : > { %v852_v43 = vsel %vm851_vm11, %v1220_v27, %v848_v40  ;;  %v860_v44 = vmul.f32 %v1222_v41, %v825_v31  ;;  %vm865_vm13 = vweird.f32 %v1222_v41 }
 0x49d   : > { %v1224_v45 = vpop.eup %1223  ;;  %v857_v46 = vsel %vm854_vm12, %v856_v42, %v852_v43  ;;  %vm866_vm0 = vmor %vm864_vm14, %vm865_vm13 }
 0x49e   : > { %v861_v47 = vsub.f32 1.0, %v860_v44  ;;  %v875_v48 = vmul.f32 %v1224_v45, %v828_v35  ;;  %v858_v49 = vmul.f32 %v1511_v7, %v857_v46  ;;  %vm880_vm15 = vweird.f32 %v1224_v45 }
 0x49f   : > { %vm881_vm5 = vmor %vm879_vm2, %vm880_vm15 }
 0x4a0   : > { %v862_v50 = vmul.f32 %v1222_v41, %v861_v47  ;;  %v876_v52 = vsub.f32 1.0, %v875_v48  ;;  %1135 = vmatmul.msk.f32.vlgmr.msra.gmra.mxu3 %vm461_vm1, %v858_v49 }
 0x4a2   : > { %v863_v55 = vadd.f32 %v1222_v41, %v862_v50  ;;  %v877_v56 = vmul.f32 %v1224_v45, %v876_v52 }
 0x4a4   : > { %v867_v58 = vsel %vm866_vm0, %v1222_v41, %v863_v55  ;;  %v878_v60 = vadd.f32 %v1224_v45, %v877_v56 }
 0x4a5   : > { %v872_v62 = vsel %vm869_vm4, %v871_v59, %v867_v58 }
 0x4a6   : > { %v882_v63 = vsel %vm881_vm5, %v1224_v45, %v878_v60  ;;  %v873_v5 = vmul.f32 %v1515_v12, %v872_v62 }
 0x4a7   : > { %v887_v0 = vsel %vm884_vm6, %v886_v61, %v882_v63  ;;  %v1204_v1 = vpop.permute.xlu0 %1203 }
 0x4a8   : > { %v888_v2 = vmul.f32 %v1519_v14, %v887_v0  ;;  %v1206_v3 = vunpack.i.h.bf16 %v1204_v1  ;;  %v1205_v4 = vunpack.i.l.bf16 %v1204_v1 }
 0x4aa   : > { %962 = vmatpush.msra.mxu0 %v1205_v4  ;;  %988 = vmatpush.msra.mxu1 %v1206_v3 }
 0x4ab   : > { %1136 = vmatmul.msk.f32.vlgmr.msra.gmra.mxu0 %vm461_vm1, %v873_v5  ;;  %1137 = vmatmul.msk.f32.vlgmr.msra.gmra.mxu1 %vm461_vm1, %v888_v2 }
 0x515   : > { %v912_v6 = vpop.f32.mrf.mxu1 }
 0x516   : > { %993 = vst.msk [vmem:[%s304_s21] sm:$0xff] %vm609_vm3, %v912_v6 }
 0x523   : > { %v938_v7 = vpop.f32.mrf.mxu3 }
 0x524   : > { %994 = vst.msk [vmem:[%s304_s21 + $0x8] sm:$0xff] %vm609_vm3, %v938_v7 }
 0x528   : > { %v964_v8 = vpop.f32.mrf.mxu0  ;;  %v990_v9 = vpop.f32.mrf.mxu1 }
 0x529   : > { %995 = vst.msk [vmem:[%s304_s21 + $0x10] sm:$0xff] %vm609_vm3, %v964_v8 }
 0x52a   : > { %996 = vst.msk [vmem:[%s304_s21 + $0x18] sm:$0xff] %vm609_vm3, %v990_v9 }
 0x52b   : > { %1252 = shalt.err (!%p1249_p3)
}
 0x52c   : > { %s1293_s19 = smov 128   ;;  %s1294_s21 = smov 8  }
 0x52d   : > { %1144 = dma.vmem_to_hbm [thread:$0]  (%p1373_p5), %s1011_s9, 512, %s1013_s13, %s998_s14, %s1293_s19, %s1293_s19, %s1294_s21  }
 0x52e PF: > { %p1150_p4 = scmp.ge.s32.totalorder %s1287_s27, 2  ;;  %s1027_s23 = sand.u32 1, %s1275_s24  }
 0x52f   : > { %s1028_s29 = scalar_lea.sflag [#allocation3], %s1027_s23 }
 0x530   : > { %p1147_p7 = pnand %p1150_p4, %p1377_p6 }
 0x532   : > { %p1148_p8 = pneg %p1147_p7 }
 0x534   : > { %1270 = dma.done.wait (%p1148_p8), %s1028_s29, 512  }
 0x535   : > { %1272 = vsyncadd (%p1148_p8), %s1028_s29, 4294966784  ;;  %p17_p9 = scmp.ge.s32.totalorder %s1360_s30, 6   ;;  %s1579_s24 = smov %s1279_s25 }
 0x536   : > { %s1580_s25 = smov %s1283_s26  ;;  %s1581_s26 = smov %s1371_s10 }
 0x537   : > { %s1582_s27 = smov %s1360_s30  ;;  %19 = sbr.rel (!%p17_p9) target bundleno = 3 (0x3), region = 89 }
 0x53c   :  { %1034 = vsyncpa [#allocation3], 1 }
 0x53d   :  { %1036 = vsyncpa [#allocation3 + $0x1], 1 }

</bundles_post_ra>
